<compile_context>
chip_gen: v6e
topology: v6e:2x2x1
jax: 0.10.0
libtpu: 0.0.40
codegen_flags: <defaults>
</compile_context>

<pallas_src>
import numpy as np
import jax
import jax.numpy as jnp
from jax.experimental import pallas as pl
from jax.experimental.pallas import tpu as pltpu

NEG_FILL = -1.0e30      # finite "minus infinity": non-edge bias / acc init (bf16-safe)
CLASS_PAD = -1.0e30     # additive bias on padded class columns (vanishes in softmax)
LANE = 128              # padded channel width (lane-dense)


def _round_up(a, b):
    return (a + b - 1) // b * b


# ----------------------------------------------------------------------------
# Fused kernel.
#   inputs : x(N,C)[ANY]  w(L,C,C)  b(L,1,C)  adj2(N,2N)bf16  hw(C,C)  hb(1,C)
#   output : o(N,C)
#   scratch: feat(N,C) hlin(N,C) acc(tm,C) (f32, resident) + DMA semaphore
# adj2 packs two interleaved lanes per source j:
#   lane 2j   : norm(j->i)                       (0.0 if no edge)
#   lane 2j+1 : 0.0 if edge, NEG_FILL if no edge (additive mask bias)
# ----------------------------------------------------------------------------
def edge_gcn_fused_kernel(x_hbm, w_ref, b_ref, adj2_ref, hw_ref, hb_ref,
                          o_ref, feat_ref, hlin_ref, acc_ref, dma_sem):
    l = pl.program_id(0)
    i = pl.program_id(1)
    k = pl.program_id(2)
    n_layers = pl.num_programs(0)
    n_src = pl.num_programs(2)

    tm = acc_ref.shape[0]
    tk = adj2_ref.shape[1] // 2
    C = feat_ref.shape[1]

    # ---- per-layer prologue: hlin = feat @ W_l (one big MXU matmul) --------
    @pl.when(jnp.logical_and(i == 0, k == 0))
    def _():
        @pl.when(l == 0)
        def _():
            # One-shot HBM -> VMEM copy of the node features (x is not a
            # blocked input, so it does not occupy two resident VMEM buffers).
            cp = pltpu.make_async_copy(x_hbm, feat_ref, dma_sem)
            cp.start()
            cp.wait()
        hlin_ref[...] = jnp.dot(feat_ref[...], w_ref[0],
                                preferred_element_type=jnp.float32)

    # ---- init the running-max accumulator for this destination tile --------
    @pl.when(k == 0)
    def _():
        acc_ref[...] = jnp.full(acc_ref.shape, NEG_FILL, acc_ref.dtype)

    # ---- scatter-max over this (tm dst, tk src) tile ------------------------
    # Per source: one tiny MXU matmul produces norm*h_j (+ -1e30 on non-edges)
    # broadcast over the tm destinations; the VPU only does the running max.
    ones_row = jnp.ones((1, C), jnp.float32)
    src_base = k * tk
    acc = acc_ref[...]
    for j in range(tk):
        lhs = adj2_ref[:, 2 * j:2 * j + 2].astype(jnp.float32)        # (tm, 2)
        h_row = hlin_ref[pl.ds(src_base + j, 1), :]                   # (1, C)
        rhs = jnp.concatenate([h_row, ones_row], axis=0)              # (2, C)
        msg = jnp.dot(lhs, rhs, preferred_element_type=jnp.float32)   # (tm, C)
        acc = jnp.maximum(acc, msg)
    acc_ref[...] = acc

    # ---- layer epilogue at the last source tile: +bias, ReLU, hand-off -----
    @pl.when(k == n_src - 1)
    def _():
        layer_out = jnp.maximum(acc + b_ref[0], 0.0)                  # (tm, C)
        dst0 = pl.multiple_of(i * tm, tm)
        feat_ref[pl.ds(dst0, tm), :] = layer_out

        @pl.when(l == n_layers - 1)
        def _():
            # Final Linear + log_softmax (padded class columns carry -1e30
            # bias so they vanish from the softmax).
            logits = jnp.dot(layer_out, hw_ref[...],
                             preferred_element_type=jnp.float32) + hb_ref[...]
            mx = jnp.max(logits, axis=-1, keepdims=True)
            z = logits - mx
            lse = jnp.log(jnp.sum(jnp.exp(z), axis=-1, keepdims=True))
            o_ref[...] = z - lse
    # NOTE: for l < n_layers-1 the revisited output block is flushed with
    # stale data; the final-layer writes land last (sequential grid), so the
    # result is correct -- just do not donate/alias the output buffer.


def novel_edge_gcn_forward(x_pad, w_stack, b_stack, adj2, head_w, head_b,
                           *, tm, tk):
    n_layers, C, _ = w_stack.shape
    n_pad = x_pad.shape[0]
    assert n_pad % tm == 0 and n_pad % tk == 0
    grid = (n_layers, n_pad // tm, n_pad // tk)

    return pl.pallas_call(
        edge_gcn_fused_kernel,
        out_shape=jax.ShapeDtypeStruct((n_pad, C), jnp.float32),
        grid_spec=pltpu.PrefetchScalarGridSpec(
            num_scalar_prefetch=0,
            grid=grid,
            in_specs=[
                pl.BlockSpec(memory_space=pl.ANY),                    # x (HBM, one-shot DMA)
                pl.BlockSpec((1, C, C), lambda l, i, k: (l, 0, 0)),   # stacked lin W
                pl.BlockSpec((1, 1, C), lambda l, i, k: (l, 0, 0)),   # stacked lin bias
                pl.BlockSpec((tm, 2 * tk), lambda l, i, k: (i, k)),   # packed edge tile
                pl.BlockSpec((C, C), lambda l, i, k: (0, 0)),         # head W (resident)
                pl.BlockSpec((1, C), lambda l, i, k: (0, 0)),         # head bias
            ],
            out_specs=pl.BlockSpec((tm, C), lambda l, i, k: (i, 0)),
            scratch_shapes=[
                pltpu.VMEM((n_pad, C), jnp.float32),   # feat: layer input/output
                pltpu.VMEM((n_pad, C), jnp.float32),   # hlin: feat @ W_l
                pltpu.VMEM((tm, C), jnp.float32),      # running-max accumulator
                pltpu.SemaphoreType.DMA,               # x -> feat copy semaphore
            ],
        ),
        compiler_params=pltpu.CompilerParams(
            dimension_semantics=("arbitrary", "arbitrary", "arbitrary"),
            vmem_limit_bytes=32 * 1024 * 1024,   # tiny footprint here; re-budget per gen
        ),
    )(x_pad, w_stack, b_stack, adj2, head_w, head_b)


# ----------------------------------------------------------------------------
# Host-side graph preprocessing: per-edge structural Jaccard of the
# neighborhood-subgraph edge sets (args.similar_measure == 'edge'), with
# self-loops appended exactly as add_self_loops does.  Scalar graph
# bookkeeping (networkx in the original) stays on the host, computed once.
# TODO(synk): similar_measure == 'edit_dist' (nx.graph_edit_distance) and the
# combine_aggr Linear (only used by aggr='multi') are not instantiated; the
# module's default aggr='max' path is what this kernel implements.
# ----------------------------------------------------------------------------
def compute_edge_norm(edge_index, num_nodes):
    src = list(edge_index[0]) + list(range(num_nodes))
    dst = list(edge_index[1]) + list(range(num_nodes))

    adj = {n: set() for n in range(num_nodes)}
    und_edges = set()
    for s, d in zip(src, dst):
        adj[s].add(d)
        adj[d].add(s)
        und_edges.add((min(s, d), max(s, d)))

    def subgraph_edges(nodes):
        ns = set(nodes)
        return {(u, v) for (u, v) in und_edges if u in ns and v in ns}

    norm = []
    for s, d in zip(src, dst):
        ei = subgraph_edges(adj[s])
        ej = subgraph_edges(adj[d])
        union = ei | ej
        inter = ei & ej
        norm.append(len(inter) / len(union) if union else 0.0)
    return (np.asarray(norm, np.float32),
            np.asarray(src, np.int64),
            np.asarray(dst, np.int64))


# ----------------------------------------------------------------------------
if __name__ == "__main__":
    key = jax.random.PRNGKey(0)

    # Small problem consistent with the module.
    N = 16              # nodes
    num_in = 8          # num_in_features
    hidden = 32         # num_hidden_features
    num_classes = 4
    num_layers = 2

    # Deterministic small graph: bidirected ring + one chord.
    src, dst = [], []
    for v in range(N):
        src += [v, (v + 1) % N]
        dst += [(v + 1) % N, v]
    src += [0, 8]
    dst += [8, 0]
    edge_index = np.array([src, dst], dtype=np.int64)

    # Per-edge similarity norm (with self-loops appended).
    norm, src_sl, dst_sl = compute_edge_norm(edge_index, N)

    # Padded / tiled sizes.
    C = LANE
    assert max(num_in, hidden, num_classes) <= C
    if N <= 512:
        n_pad = _round_up(N, 16)          # single tile: all per-step overhead amortized
        tm = tk = n_pad
    else:
        tm, tk = 128, 256                 # larger src tile per the perf review
        n_pad = _round_up(N, 256)

    # Packed dense adjacency: two interleaved bf16 lanes per source.
    adj2_np = np.zeros((n_pad, 2 * n_pad), np.float32)
    adj2_np[:, 1::2] = NEG_FILL                      # default: non-edge mask bias
    for e in range(len(src_sl)):
        d, s = int(dst_sl[e]), int(src_sl[e])
        adj2_np[d, 2 * s] = norm[e]                  # edge weight
        adj2_np[d, 2 * s + 1] = 0.0                  # edge -> no bias
    adj2 = jnp.asarray(adj2_np, jnp.bfloat16)

    keys = jax.random.split(key, 3 + num_layers)
    x = jax.random.normal(keys[0], (N, num_in), jnp.float32)

    # Parameters (PyTorch nn.Linear default init), pre-transposed to (Cin, Cout).
    w_list, b_list = [], []
    fan = num_in
    for l in range(num_layers):
        bound = 1.0 / np.sqrt(fan)
        w_list.append(jax.random.uniform(keys[1 + l], (fan, hidden), jnp.float32,
                                         -bound, bound))
        b_list.append(jnp.zeros((hidden,), jnp.float32))   # Edge_GCNConv bias zeroed
        fan = hidden
    hw = jax.random.uniform(keys[1 + num_layers], (hidden, num_classes),
                            jnp.float32, -1.0 / np.sqrt(hidden), 1.0 / np.sqrt(hidden))
    hb = jax.random.uniform(keys[2 + num_layers], (num_classes,),
                            jnp.float32, -1.0 / np.sqrt(hidden), 1.0 / np.sqrt(hidden))

    # Zero-pad everything to the lane-dense (=128) layout expected by the kernel.
    x_pad = jnp.zeros((n_pad, C), jnp.float32).at[:N, :num_in].set(x)
    w_stack = np.zeros((num_layers, C, C), np.float32)
    b_stack = np.zeros((num_layers, 1, C), np.float32)
    fan = num_in
    for l in range(num_layers):
        w_stack[l, :fan, :hidden] = np.asarray(w_list[l])
        b_stack[l, 0, :hidden] = np.asarray(b_list[l])
        fan = hidden
    head_w_pad = np.zeros((C, C), np.float32)
    head_w_pad[:hidden, :num_classes] = np.asarray(hw)
    head_b_pad = np.full((1, C), CLASS_PAD, np.float32)
    head_b_pad[0, :num_classes] = np.asarray(hb)

    out_pad = novel_edge_gcn_forward(
        x_pad, jnp.asarray(w_stack), jnp.asarray(b_stack), adj2,
        jnp.asarray(head_w_pad), jnp.asarray(head_b_pad), tm=tm, tk=tk)
    out_pad = jax.block_until_ready(out_pad)
    out = out_pad[:N, :num_classes]

    # Pure-JAX reference (same bf16-rounded edge weights, dense scatter-max).
    adjw_bf = np.asarray(jnp.asarray(adj2_np[:N, 0:2 * N:2], jnp.bfloat16)
                         .astype(jnp.float32))
    mask = (adj2_np[:N, 1:2 * N:2] == 0.0)
    h = x
    for l in range(num_layers):
        hl = jnp.dot(h, w_list[l], precision=jax.lax.Precision.HIGHEST)
        msg = jnp.where(jnp.asarray(mask)[:, :, None],
                        jnp.asarray(adjw_bf)[:, :, None] * hl[None, :, :],
                        -jnp.inf)
        h = jax.nn.relu(jnp.max(msg, axis=1) + b_list[l])
    logits_ref = jnp.dot(h, hw, precision=jax.lax.Precision.HIGHEST) + hb
    ref = jax.nn.log_softmax(logits_ref, axis=-1)

    assert out.shape == (N, num_classes)
    assert bool(jnp.all(jnp.isfinite(out)))
    assert bool(jnp.allclose(jnp.sum(jnp.exp(out), axis=-1), 1.0, atol=1e-4))
    assert bool(jnp.allclose(out, ref, atol=2e-2, rtol=2e-2))
    print("KERNEL_OK")
</pallas_src>

<mosaic_0001>
module attributes {stable_mosaic.version = 11 : i64} {
  func.func @edge_gcn_fused_kernel(%arg0: i32, %arg1: i32, %arg2: i32, %arg3: memref<16x128xf32, #tpu.memory_space<any>>, %arg4: memref<1x128x128xf32, #tpu.memory_space<vmem>>, %arg5: memref<1x1x128xf32, #tpu.memory_space<vmem>>, %arg6: memref<16x32xbf16, #tpu.memory_space<vmem>>, %arg7: memref<128x128xf32, #tpu.memory_space<vmem>>, %arg8: memref<1x128xf32, #tpu.memory_space<vmem>>, %arg9: memref<16x128xf32, #tpu.memory_space<vmem>>, %arg10: memref<16x128xf32, #tpu.memory_space<vmem>>, %arg11: memref<16x128xf32, #tpu.memory_space<vmem>>, %arg12: memref<16x128xf32, #tpu.memory_space<vmem>>, %arg13: memref<!tpu.dma_semaphore, #tpu.memory_space<semaphore_mem>>) attributes {dimension_semantics = [#tpu.dimension_semantics<arbitrary>, #tpu.dimension_semantics<arbitrary>, #tpu.dimension_semantics<arbitrary>], iteration_bounds = array<i64: 2, 1, 1>, scalar_prefetch = 0 : i64, scratch_operands = 4 : i64, tpu.core_type = #tpu.core_type<tc>, window_params = [{}, {transform_indices = @transform_1, window_bounds = array<i64: 1, 128, 128>}, {transform_indices = @transform_2, window_bounds = array<i64: 1, 1, 128>}, {transform_indices = @transform_3, window_bounds = array<i64: 16, 32>}, {pipeline_mode = #tpu.pipeline_mode<synchronous>, transform_indices = @transform_4, window_bounds = array<i64: 128, 128>}, {pipeline_mode = #tpu.pipeline_mode<synchronous>, transform_indices = @transform_5, window_bounds = array<i64: 1, 128>}, {transform_indices = @transform_6, window_bounds = array<i64: 16, 128>}]} {
    %c0_i32 = arith.constant 0 : i32
    %0 = arith.cmpi eq, %arg1, %c0_i32 : i32
    %c0_i32_0 = arith.constant 0 : i32
    %1 = arith.cmpi eq, %arg2, %c0_i32_0 : i32
    %2 = arith.andi %0, %1 : i1
    %3 = arith.extui %2 : i1 to i32
    %c0_i32_1 = arith.constant 0 : i32
    %4 = arith.cmpi ne, %3, %c0_i32_1 : i32
    scf.if %4 {
      %c0_i32_59 = arith.constant 0 : i32
      %143 = arith.cmpi eq, %arg0, %c0_i32_59 : i32
      %144 = arith.extui %143 : i1 to i32
      %c0_i32_60 = arith.constant 0 : i32
      %145 = arith.cmpi ne, %144, %c0_i32_60 : i32
      scf.if %145 {
        tpu.enqueue_dma source(%arg3 : memref<16x128xf32, #tpu.memory_space<any>>) target(%arg10 : memref<16x128xf32, #tpu.memory_space<vmem>>) target_semaphore(%arg13 : memref<!tpu.dma_semaphore, #tpu.memory_space<semaphore_mem>>)
        tpu.wait_dma2 semaphore(%arg13 : memref<!tpu.dma_semaphore, #tpu.memory_space<semaphore_mem>>) src(%arg3 : memref<16x128xf32, #tpu.memory_space<any>>) dst(%arg10 : memref<16x128xf32, #tpu.memory_space<vmem>>)
      } else {
      }
      %c0_61 = arith.constant 0 : index
      %c0_62 = arith.constant 0 : index
      %146 = vector.load %arg10[%c0_61, %c0_62] : memref<16x128xf32, #tpu.memory_space<vmem>>, vector<16x128xf32>
      %c0_63 = arith.constant 0 : index
      %c0_64 = arith.constant 0 : index
      %c0_65 = arith.constant 0 : index
      %147 = vector.load %arg4[%c0_63, %c0_64, %c0_65] : memref<1x128x128xf32, #tpu.memory_space<vmem>>, vector<1x128x128xf32>
      %148 = vector.shape_cast %147 : vector<1x128x128xf32> to vector<128x128xf32>
      %cst_66 = arith.constant dense<0.000000e+00> : vector<16x128xf32>
      %149 = tpu.matmul %146, %148, %cst_66 {dimension_numbers = #tpu.dot_dimension_numbers<[1], [0], [0], [1], [0, 0, 1, 1], [], []>} : vector<16x128xf32>, vector<128x128xf32>, vector<16x128xf32> -> vector<16x128xf32>
      %c0_67 = arith.constant 0 : index
      %c0_68 = arith.constant 0 : index
      %150 = vector.load %arg11[%c0_67, %c0_68] : memref<16x128xf32, #tpu.memory_space<vmem>>, vector<16x128xf32>
      tpu.vector_store %arg11[%c0_67, %c0_68], %149 {strides = array<i32>} : memref<16x128xf32, #tpu.memory_space<vmem>>, vector<16x128xf32>,
    } else {
    }
    %c0_i32_2 = arith.constant 0 : i32
    %5 = arith.cmpi eq, %arg2, %c0_i32_2 : i32
    %6 = arith.extui %5 : i1 to i32
    %c0_i32_3 = arith.constant 0 : i32
    %7 = arith.cmpi ne, %6, %c0_i32_3 : i32
    scf.if %7 {
      %cst_59 = arith.constant -1.000000e+30 : f32
      %143 = vector.broadcast %cst_59 : f32 to vector<16x128xf32>
      %c0_60 = arith.constant 0 : index
      %c0_61 = arith.constant 0 : index
      %144 = vector.load %arg12[%c0_60, %c0_61] : memref<16x128xf32, #tpu.memory_space<vmem>>, vector<16x128xf32>
      tpu.vector_store %arg12[%c0_60, %c0_61], %143 {strides = array<i32>} : memref<16x128xf32, #tpu.memory_space<vmem>>, vector<16x128xf32>,
    } else {
    }
    %cst = arith.constant 1.000000e+00 : f32
    %8 = vector.broadcast %cst : f32 to vector<1x128xf32>
    %c16_i32 = arith.constant 16 : i32
    %9 = arith.muli %arg2, %c16_i32 : i32
    %c0 = arith.constant 0 : index
    %c0_4 = arith.constant 0 : index
    %10 = vector.load %arg12[%c0, %c0_4] : memref<16x128xf32, #tpu.memory_space<vmem>>, vector<16x128xf32>
    %c0_5 = arith.constant 0 : index
    %c0_6 = arith.constant 0 : index
    %11 = vector.load %arg6[%c0_5, %c0_6] : memref<16x32xbf16, #tpu.memory_space<vmem>>, vector<16x2xbf16>
    %12 = arith.extf %11 : vector<16x2xbf16> to vector<16x2xf32>
    %c0_i32_7 = arith.constant 0 : i32
    %13 = arith.addi %9, %c0_i32_7 : i32
    %14 = arith.index_cast %13 : i32 to index
    %c0_8 = arith.constant 0 : index
    %15 = vector.load %arg11[%14, %c0_8] : memref<16x128xf32, #tpu.memory_space<vmem>>, vector<1x128xf32>
    %16 = tpu.concatenate %15, %8 in 0 : vector<1x128xf32>, vector<1x128xf32> -> vector<2x128xf32>
    %cst_9 = arith.constant dense<0.000000e+00> : vector<16x128xf32>
    %17 = tpu.matmul %12, %16, %cst_9 {dimension_numbers = #tpu.dot_dimension_numbers<[1], [0], [0], [1], [0, 0, 1, 1], [], []>} : vector<16x2xf32>, vector<2x128xf32>, vector<16x128xf32> -> vector<16x128xf32>
    %18 = arith.maximumf %10, %17 : vector<16x128xf32>
    %c0_10 = arith.constant 0 : index
    %c2 = arith.constant 2 : index
    %19 = vector.load %arg6[%c0_10, %c2] : memref<16x32xbf16, #tpu.memory_space<vmem>>, vector<16x2xbf16>
    %20 = arith.extf %19 : vector<16x2xbf16> to vector<16x2xf32>
    %c1_i32 = arith.constant 1 : i32
    %21 = arith.addi %9, %c1_i32 : i32
    %22 = arith.index_cast %21 : i32 to index
    %c0_11 = arith.constant 0 : index
    %23 = vector.load %arg11[%22, %c0_11] : memref<16x128xf32, #tpu.memory_space<vmem>>, vector<1x128xf32>
    %24 = tpu.concatenate %23, %8 in 0 : vector<1x128xf32>, vector<1x128xf32> -> vector<2x128xf32>
    %cst_12 = arith.constant dense<0.000000e+00> : vector<16x128xf32>
    %25 = tpu.matmul %20, %24, %cst_12 {dimension_numbers = #tpu.dot_dimension_numbers<[1], [0], [0], [1], [0, 0, 1, 1], [], []>} : vector<16x2xf32>, vector<2x128xf32>, vector<16x128xf32> -> vector<16x128xf32>
    %26 = arith.maximumf %18, %25 : vector<16x128xf32>
    %c0_13 = arith.constant 0 : index
    %c4 = arith.constant 4 : index
    %27 = vector.load %arg6[%c0_13, %c4] : memref<16x32xbf16, #tpu.memory_space<vmem>>, vector<16x2xbf16>
    %28 = arith.extf %27 : vector<16x2xbf16> to vector<16x2xf32>
    %c2_i32 = arith.constant 2 : i32
    %29 = arith.addi %9, %c2_i32 : i32
    %30 = arith.index_cast %29 : i32 to index
    %c0_14 = arith.constant 0 : index
    %31 = vector.load %arg11[%30, %c0_14] : memref<16x128xf32, #tpu.memory_space<vmem>>, vector<1x128xf32>
    %32 = tpu.concatenate %31, %8 in 0 : vector<1x128xf32>, vector<1x128xf32> -> vector<2x128xf32>
    %cst_15 = arith.constant dense<0.000000e+00> : vector<16x128xf32>
    %33 = tpu.matmul %28, %32, %cst_15 {dimension_numbers = #tpu.dot_dimension_numbers<[1], [0], [0], [1], [0, 0, 1, 1], [], []>} : vector<16x2xf32>, vector<2x128xf32>, vector<16x128xf32> -> vector<16x128xf32>
    %34 = arith.maximumf %26, %33 : vector<16x128xf32>
    %c0_16 = arith.constant 0 : index
    %c6 = arith.constant 6 : index
    %35 = vector.load %arg6[%c0_16, %c6] : memref<16x32xbf16, #tpu.memory_space<vmem>>, vector<16x2xbf16>
    %36 = arith.extf %35 : vector<16x2xbf16> to vector<16x2xf32>
    %c3_i32 = arith.constant 3 : i32
    %37 = arith.addi %9, %c3_i32 : i32
    %38 = arith.index_cast %37 : i32 to index
    %c0_17 = arith.constant 0 : index
    %39 = vector.load %arg11[%38, %c0_17] : memref<16x128xf32, #tpu.memory_space<vmem>>, vector<1x128xf32>
    %40 = tpu.concatenate %39, %8 in 0 : vector<1x128xf32>, vector<1x128xf32> -> vector<2x128xf32>
    %cst_18 = arith.constant dense<0.000000e+00> : vector<16x128xf32>
    %41 = tpu.matmul %36, %40, %cst_18 {dimension_numbers = #tpu.dot_dimension_numbers<[1], [0], [0], [1], [0, 0, 1, 1], [], []>} : vector<16x2xf32>, vector<2x128xf32>, vector<16x128xf32> -> vector<16x128xf32>
    %42 = arith.maximumf %34, %41 : vector<16x128xf32>
    %c0_19 = arith.constant 0 : index
    %c8 = arith.constant 8 : index
    %43 = vector.load %arg6[%c0_19, %c8] : memref<16x32xbf16, #tpu.memory_space<vmem>>, vector<16x2xbf16>
    %44 = arith.extf %43 : vector<16x2xbf16> to vector<16x2xf32>
    %c4_i32 = arith.constant 4 : i32
    %45 = arith.addi %9, %c4_i32 : i32
    %46 = arith.index_cast %45 : i32 to index
    %c0_20 = arith.constant 0 : index
    %47 = vector.load %arg11[%46, %c0_20] : memref<16x128xf32, #tpu.memory_space<vmem>>, vector<1x128xf32>
    %48 = tpu.concatenate %47, %8 in 0 : vector<1x128xf32>, vector<1x128xf32> -> vector<2x128xf32>
    %cst_21 = arith.constant dense<0.000000e+00> : vector<16x128xf32>
    %49 = tpu.matmul %44, %48, %cst_21 {dimension_numbers = #tpu.dot_dimension_numbers<[1], [0], [0], [1], [0, 0, 1, 1], [], []>} : vector<16x2xf32>, vector<2x128xf32>, vector<16x128xf32> -> vector<16x128xf32>
    %50 = arith.maximumf %42, %49 : vector<16x128xf32>
    %c0_22 = arith.constant 0 : index
    %c10 = arith.constant 10 : index
    %51 = vector.load %arg6[%c0_22, %c10] : memref<16x32xbf16, #tpu.memory_space<vmem>>, vector<16x2xbf16>
    %52 = arith.extf %51 : vector<16x2xbf16> to vector<16x2xf32>
    %c5_i32 = arith.constant 5 : i32
    %53 = arith.addi %9, %c5_i32 : i32
    %54 = arith.index_cast %53 : i32 to index
    %c0_23 = arith.constant 0 : index
    %55 = vector.load %arg11[%54, %c0_23] : memref<16x128xf32, #tpu.memory_space<vmem>>, vector<1x128xf32>
    %56 = tpu.concatenate %55, %8 in 0 : vector<1x128xf32>, vector<1x128xf32> -> vector<2x128xf32>
    %cst_24 = arith.constant dense<0.000000e+00> : vector<16x128xf32>
    %57 = tpu.matmul %52, %56, %cst_24 {dimension_numbers = #tpu.dot_dimension_numbers<[1], [0], [0], [1], [0, 0, 1, 1], [], []>} : vector<16x2xf32>, vector<2x128xf32>, vector<16x128xf32> -> vector<16x128xf32>
    %58 = arith.maximumf %50, %57 : vector<16x128xf32>
    %c0_25 = arith.constant 0 : index
    %c12 = arith.constant 12 : index
    %59 = vector.load %arg6[%c0_25, %c12] : memref<16x32xbf16, #tpu.memory_space<vmem>>, vector<16x2xbf16>
    %60 = arith.extf %59 : vector<16x2xbf16> to vector<16x2xf32>
    %c6_i32 = arith.constant 6 : i32
    %61 = arith.addi %9, %c6_i32 : i32
    %62 = arith.index_cast %61 : i32 to index
    %c0_26 = arith.constant 0 : index
    %63 = vector.load %arg11[%62, %c0_26] : memref<16x128xf32, #tpu.memory_space<vmem>>, vector<1x128xf32>
    %64 = tpu.concatenate %63, %8 in 0 : vector<1x128xf32>, vector<1x128xf32> -> vector<2x128xf32>
    %cst_27 = arith.constant dense<0.000000e+00> : vector<16x128xf32>
    %65 = tpu.matmul %60, %64, %cst_27 {dimension_numbers = #tpu.dot_dimension_numbers<[1], [0], [0], [1], [0, 0, 1, 1], [], []>} : vector<16x2xf32>, vector<2x128xf32>, vector<16x128xf32> -> vector<16x128xf32>
    %66 = arith.maximumf %58, %65 : vector<16x128xf32>
    %c0_28 = arith.constant 0 : index
    %c14 = arith.constant 14 : index
    %67 = vector.load %arg6[%c0_28, %c14] : memref<16x32xbf16, #tpu.memory_space<vmem>>, vector<16x2xbf16>
    %68 = arith.extf %67 : vector<16x2xbf16> to vector<16x2xf32>
    %c7_i32 = arith.constant 7 : i32
    %69 = arith.addi %9, %c7_i32 : i32
    %70 = arith.index_cast %69 : i32 to index
    %c0_29 = arith.constant 0 : index
    %71 = vector.load %arg11[%70, %c0_29] : memref<16x128xf32, #tpu.memory_space<vmem>>, vector<1x128xf32>
    %72 = tpu.concatenate %71, %8 in 0 : vector<1x128xf32>, vector<1x128xf32> -> vector<2x128xf32>
    %cst_30 = arith.constant dense<0.000000e+00> : vector<16x128xf32>
    %73 = tpu.matmul %68, %72, %cst_30 {dimension_numbers = #tpu.dot_dimension_numbers<[1], [0], [0], [1], [0, 0, 1, 1], [], []>} : vector<16x2xf32>, vector<2x128xf32>, vector<16x128xf32> -> vector<16x128xf32>
    %74 = arith.maximumf %66, %73 : vector<16x128xf32>
    %c0_31 = arith.constant 0 : index
    %c16 = arith.constant 16 : index
    %75 = vector.load %arg6[%c0_31, %c16] : memref<16x32xbf16, #tpu.memory_space<vmem>>, vector<16x2xbf16>
    %76 = arith.extf %75 : vector<16x2xbf16> to vector<16x2xf32>
    %c8_i32 = arith.constant 8 : i32
    %77 = arith.addi %9, %c8_i32 : i32
    %78 = arith.index_cast %77 : i32 to index
    %c0_32 = arith.constant 0 : index
    %79 = vector.load %arg11[%78, %c0_32] : memref<16x128xf32, #tpu.memory_space<vmem>>, vector<1x128xf32>
    %80 = tpu.concatenate %79, %8 in 0 : vector<1x128xf32>, vector<1x128xf32> -> vector<2x128xf32>
    %cst_33 = arith.constant dense<0.000000e+00> : vector<16x128xf32>
    %81 = tpu.matmul %76, %80, %cst_33 {dimension_numbers = #tpu.dot_dimension_numbers<[1], [0], [0], [1], [0, 0, 1, 1], [], []>} : vector<16x2xf32>, vector<2x128xf32>, vector<16x128xf32> -> vector<16x128xf32>
    %82 = arith.maximumf %74, %81 : vector<16x128xf32>
    %c0_34 = arith.constant 0 : index
    %c18 = arith.constant 18 : index
    %83 = vector.load %arg6[%c0_34, %c18] : memref<16x32xbf16, #tpu.memory_space<vmem>>, vector<16x2xbf16>
    %84 = arith.extf %83 : vector<16x2xbf16> to vector<16x2xf32>
    %c9_i32 = arith.constant 9 : i32
    %85 = arith.addi %9, %c9_i32 : i32
    %86 = arith.index_cast %85 : i32 to index
    %c0_35 = arith.constant 0 : index
    %87 = vector.load %arg11[%86, %c0_35] : memref<16x128xf32, #tpu.memory_space<vmem>>, vector<1x128xf32>
    %88 = tpu.concatenate %87, %8 in 0 : vector<1x128xf32>, vector<1x128xf32> -> vector<2x128xf32>
    %cst_36 = arith.constant dense<0.000000e+00> : vector<16x128xf32>
    %89 = tpu.matmul %84, %88, %cst_36 {dimension_numbers = #tpu.dot_dimension_numbers<[1], [0], [0], [1], [0, 0, 1, 1], [], []>} : vector<16x2xf32>, vector<2x128xf32>, vector<16x128xf32> -> vector<16x128xf32>
    %90 = arith.maximumf %82, %89 : vector<16x128xf32>
    %c0_37 = arith.constant 0 : index
    %c20 = arith.constant 20 : index
    %91 = vector.load %arg6[%c0_37, %c20] : memref<16x32xbf16, #tpu.memory_space<vmem>>, vector<16x2xbf16>
    %92 = arith.extf %91 : vector<16x2xbf16> to vector<16x2xf32>
    %c10_i32 = arith.constant 10 : i32
    %93 = arith.addi %9, %c10_i32 : i32
    %94 = arith.index_cast %93 : i32 to index
    %c0_38 = arith.constant 0 : index
    %95 = vector.load %arg11[%94, %c0_38] : memref<16x128xf32, #tpu.memory_space<vmem>>, vector<1x128xf32>
    %96 = tpu.concatenate %95, %8 in 0 : vector<1x128xf32>, vector<1x128xf32> -> vector<2x128xf32>
    %cst_39 = arith.constant dense<0.000000e+00> : vector<16x128xf32>
    %97 = tpu.matmul %92, %96, %cst_39 {dimension_numbers = #tpu.dot_dimension_numbers<[1], [0], [0], [1], [0, 0, 1, 1], [], []>} : vector<16x2xf32>, vector<2x128xf32>, vector<16x128xf32> -> vector<16x128xf32>
    %98 = arith.maximumf %90, %97 : vector<16x128xf32>
    %c0_40 = arith.constant 0 : index
    %c22 = arith.constant 22 : index
    %99 = vector.load %arg6[%c0_40, %c22] : memref<16x32xbf16, #tpu.memory_space<vmem>>, vector<16x2xbf16>
    %100 = arith.extf %99 : vector<16x2xbf16> to vector<16x2xf32>
    %c11_i32 = arith.constant 11 : i32
    %101 = arith.addi %9, %c11_i32 : i32
    %102 = arith.index_cast %101 : i32 to index
    %c0_41 = arith.constant 0 : index
    %103 = vector.load %arg11[%102, %c0_41] : memref<16x128xf32, #tpu.memory_space<vmem>>, vector<1x128xf32>
    %104 = tpu.concatenate %103, %8 in 0 : vector<1x128xf32>, vector<1x128xf32> -> vector<2x128xf32>
    %cst_42 = arith.constant dense<0.000000e+00> : vector<16x128xf32>
    %105 = tpu.matmul %100, %104, %cst_42 {dimension_numbers = #tpu.dot_dimension_numbers<[1], [0], [0], [1], [0, 0, 1, 1], [], []>} : vector<16x2xf32>, vector<2x128xf32>, vector<16x128xf32> -> vector<16x128xf32>
    %106 = arith.maximumf %98, %105 : vector<16x128xf32>
    %c0_43 = arith.constant 0 : index
    %c24 = arith.constant 24 : index
    %107 = vector.load %arg6[%c0_43, %c24] : memref<16x32xbf16, #tpu.memory_space<vmem>>, vector<16x2xbf16>
    %108 = arith.extf %107 : vector<16x2xbf16> to vector<16x2xf32>
    %c12_i32 = arith.constant 12 : i32
    %109 = arith.addi %9, %c12_i32 : i32
    %110 = arith.index_cast %109 : i32 to index
    %c0_44 = arith.constant 0 : index
    %111 = vector.load %arg11[%110, %c0_44] : memref<16x128xf32, #tpu.memory_space<vmem>>, vector<1x128xf32>
    %112 = tpu.concatenate %111, %8 in 0 : vector<1x128xf32>, vector<1x128xf32> -> vector<2x128xf32>
    %cst_45 = arith.constant dense<0.000000e+00> : vector<16x128xf32>
    %113 = tpu.matmul %108, %112, %cst_45 {dimension_numbers = #tpu.dot_dimension_numbers<[1], [0], [0], [1], [0, 0, 1, 1], [], []>} : vector<16x2xf32>, vector<2x128xf32>, vector<16x128xf32> -> vector<16x128xf32>
    %114 = arith.maximumf %106, %113 : vector<16x128xf32>
    %c0_46 = arith.constant 0 : index
    %c26 = arith.constant 26 : index
    %115 = vector.load %arg6[%c0_46, %c26] : memref<16x32xbf16, #tpu.memory_space<vmem>>, vector<16x2xbf16>
    %116 = arith.extf %115 : vector<16x2xbf16> to vector<16x2xf32>
    %c13_i32 = arith.constant 13 : i32
    %117 = arith.addi %9, %c13_i32 : i32
    %118 = arith.index_cast %117 : i32 to index
    %c0_47 = arith.constant 0 : index
    %119 = vector.load %arg11[%118, %c0_47] : memref<16x128xf32, #tpu.memory_space<vmem>>, vector<1x128xf32>
    %120 = tpu.concatenate %119, %8 in 0 : vector<1x128xf32>, vector<1x128xf32> -> vector<2x128xf32>
    %cst_48 = arith.constant dense<0.000000e+00> : vector<16x128xf32>
    %121 = tpu.matmul %116, %120, %cst_48 {dimension_numbers = #tpu.dot_dimension_numbers<[1], [0], [0], [1], [0, 0, 1, 1], [], []>} : vector<16x2xf32>, vector<2x128xf32>, vector<16x128xf32> -> vector<16x128xf32>
    %122 = arith.maximumf %114, %121 : vector<16x128xf32>
    %c0_49 = arith.constant 0 : index
    %c28 = arith.constant 28 : index
    %123 = vector.load %arg6[%c0_49, %c28] : memref<16x32xbf16, #tpu.memory_space<vmem>>, vector<16x2xbf16>
    %124 = arith.extf %123 : vector<16x2xbf16> to vector<16x2xf32>
    %c14_i32 = arith.constant 14 : i32
    %125 = arith.addi %9, %c14_i32 : i32
    %126 = arith.index_cast %125 : i32 to index
    %c0_50 = arith.constant 0 : index
    %127 = vector.load %arg11[%126, %c0_50] : memref<16x128xf32, #tpu.memory_space<vmem>>, vector<1x128xf32>
    %128 = tpu.concatenate %127, %8 in 0 : vector<1x128xf32>, vector<1x128xf32> -> vector<2x128xf32>
    %cst_51 = arith.constant dense<0.000000e+00> : vector<16x128xf32>
    %129 = tpu.matmul %124, %128, %cst_51 {dimension_numbers = #tpu.dot_dimension_numbers<[1], [0], [0], [1], [0, 0, 1, 1], [], []>} : vector<16x2xf32>, vector<2x128xf32>, vector<16x128xf32> -> vector<16x128xf32>
    %130 = arith.maximumf %122, %129 : vector<16x128xf32>
    %c0_52 = arith.constant 0 : index
    %c30 = arith.constant 30 : index
    %131 = vector.load %arg6[%c0_52, %c30] : memref<16x32xbf16, #tpu.memory_space<vmem>>, vector<16x2xbf16>
    %132 = arith.extf %131 : vector<16x2xbf16> to vector<16x2xf32>
    %c15_i32 = arith.constant 15 : i32
    %133 = arith.addi %9, %c15_i32 : i32
    %134 = arith.index_cast %133 : i32 to index
    %c0_53 = arith.constant 0 : index
    %135 = vector.load %arg11[%134, %c0_53] : memref<16x128xf32, #tpu.memory_space<vmem>>, vector<1x128xf32>
    %136 = tpu.concatenate %135, %8 in 0 : vector<1x128xf32>, vector<1x128xf32> -> vector<2x128xf32>
    %cst_54 = arith.constant dense<0.000000e+00> : vector<16x128xf32>
    %137 = tpu.matmul %132, %136, %cst_54 {dimension_numbers = #tpu.dot_dimension_numbers<[1], [0], [0], [1], [0, 0, 1, 1], [], []>} : vector<16x2xf32>, vector<2x128xf32>, vector<16x128xf32> -> vector<16x128xf32>
    %138 = arith.maximumf %130, %137 : vector<16x128xf32>
    %c0_55 = arith.constant 0 : index
    %c0_56 = arith.constant 0 : index
    %139 = vector.load %arg12[%c0_55, %c0_56] : memref<16x128xf32, #tpu.memory_space<vmem>>, vector<16x128xf32>
    tpu.vector_store %arg12[%c0_55, %c0_56], %138 {strides = array<i32>} : memref<16x128xf32, #tpu.memory_space<vmem>>, vector<16x128xf32>,
    %c0_i32_57 = arith.constant 0 : i32
    %140 = arith.cmpi eq, %arg2, %c0_i32_57 : i32
    %141 = arith.extui %140 : i1 to i32
    %c0_i32_58 = arith.constant 0 : i32
    %142 = arith.cmpi ne, %141, %c0_i32_58 : i32
    scf.if %142 {
      %c0_59 = arith.constant 0 : index
      %c0_60 = arith.constant 0 : index
      %c0_61 = arith.constant 0 : index
      %143 = vector.load %arg5[%c0_59, %c0_60, %c0_61] : memref<1x1x128xf32, #tpu.memory_space<vmem>>, vector<1x1x128xf32>
      %144 = vector.shape_cast %143 : vector<1x1x128xf32> to vector<1x128xf32>
      %145 = vector.broadcast %144 : vector<1x128xf32> to vector<16x128xf32>
      %146 = arith.addf %138, %145 : vector<16x128xf32>
      %cst_62 = arith.constant 0.000000e+00 : f32
      %147 = vector.broadcast %cst_62 : f32 to vector<16x128xf32>
      %148 = arith.maximumf %146, %147 : vector<16x128xf32>
      %c16_i32_63 = arith.constant 16 : i32
      %149 = arith.muli %arg1, %c16_i32_63 : i32
      %150 = tpu.assume_multiple %149, 16 : i32
      %151 = arith.index_cast %150 : i32 to index
      %c0_64 = arith.constant 0 : index
      %152 = vector.load %arg10[%151, %c0_64] : memref<16x128xf32, #tpu.memory_space<vmem>>, vector<16x128xf32>
      tpu.vector_store %arg10[%151, %c0_64], %148 {strides = array<i32>} : memref<16x128xf32, #tpu.memory_space<vmem>>, vector<16x128xf32>,
      %c1_i32_65 = arith.constant 1 : i32
      %153 = arith.cmpi eq, %arg0, %c1_i32_65 : i32
      %154 = arith.extui %153 : i1 to i32
      %c0_i32_66 = arith.constant 0 : i32
      %155 = arith.cmpi ne, %154, %c0_i32_66 : i32
      scf.if %155 {
        %c0_67 = arith.constant 0 : index
        %c0_68 = arith.constant 0 : index
        %156 = vector.load %arg7[%c0_67, %c0_68] : memref<128x128xf32, #tpu.memory_space<vmem>>, vector<128x128xf32>
        %cst_69 = arith.constant dense<0.000000e+00> : vector<16x128xf32>
        %157 = tpu.matmul %148, %156, %cst_69 {dimension_numbers = #tpu.dot_dimension_numbers<[1], [0], [0], [1], [0, 0, 1, 1], [], []>} : vector<16x128xf32>, vector<128x128xf32>, vector<16x128xf32> -> vector<16x128xf32>
        %c0_70 = arith.constant 0 : index
        %c0_71 = arith.constant 0 : index
        %158 = vector.load %arg8[%c0_70, %c0_71] : memref<1x128xf32, #tpu.memory_space<vmem>>, vector<1x128xf32>
        %159 = vector.broadcast %158 : vector<1x128xf32> to vector<16x128xf32>
        %160 = arith.addf %157, %159 : vector<16x128xf32>
        %cst_72 = arith.constant dense<0xFF800000> : vector<16xf32>
        %161 = vector.multi_reduction <maximumf>, %160, %cst_72 [1] : vector<16x128xf32> to vector<16xf32>
        %162 = vector.shape_cast %161 : vector<16xf32> to vector<16x1xf32>
        %163 = vector.broadcast %162 : vector<16x1xf32> to vector<16x128xf32>
        %164 = arith.subf %160, %163 : vector<16x128xf32>
        %165 = math.exp %164 : vector<16x128xf32>
        %cst_73 = arith.constant dense<0.000000e+00> : vector<16xf32>
        %166 = vector.multi_reduction <add>, %165, %cst_73 [1] : vector<16x128xf32> to vector<16xf32>
        %167 = vector.shape_cast %166 : vector<16xf32> to vector<16x1xf32>
        %168 = math.log %167 : vector<16x1xf32>
        %169 = vector.broadcast %168 : vector<16x1xf32> to vector<16x128xf32>
        %170 = arith.subf %164, %169 : vector<16x128xf32>
        %c0_74 = arith.constant 0 : index
        %c0_75 = arith.constant 0 : index
        %171 = vector.load %arg9[%c0_74, %c0_75] : memref<16x128xf32, #tpu.memory_space<vmem>>, vector<16x128xf32>
        tpu.vector_store %arg9[%c0_74, %c0_75], %170 {strides = array<i32>} : memref<16x128xf32, #tpu.memory_space<vmem>>, vector<16x128xf32>,
      } else {
      }
    } else {
    }
    return
  }
  func.func @transform_1(%arg0: i32, %arg1: i32, %arg2: i32) -> (i32, i32, i32) {
    %c0_i32 = arith.constant 0 : i32
    %c0_i32_0 = arith.constant 0 : i32
    %c0_i32_1 = arith.constant 0 : i32
    return %arg0, %c0_i32, %c0_i32_0 : i32, i32, i32
  }
  func.func @transform_2(%arg0: i32, %arg1: i32, %arg2: i32) -> (i32, i32, i32) {
    %c0_i32 = arith.constant 0 : i32
    %c0_i32_0 = arith.constant 0 : i32
    %c0_i32_1 = arith.constant 0 : i32
    return %arg0, %c0_i32, %c0_i32_0 : i32, i32, i32
  }
  func.func @transform_3(%arg0: i32, %arg1: i32, %arg2: i32) -> (i32, i32) {
    %c0_i32 = arith.constant 0 : i32
    return %arg1, %arg2 : i32, i32
  }
  func.func @transform_4(%arg0: i32, %arg1: i32, %arg2: i32) -> (i32, i32) {
    %c0_i32 = arith.constant 0 : i32
    %c0_i32_0 = arith.constant 0 : i32
    %c0_i32_1 = arith.constant 0 : i32
    return %c0_i32, %c0_i32_0 : i32, i32
  }
  func.func @transform_5(%arg0: i32, %arg1: i32, %arg2: i32) -> (i32, i32) {
    %c0_i32 = arith.constant 0 : i32
    %c0_i32_0 = arith.constant 0 : i32
    %c0_i32_1 = arith.constant 0 : i32
    return %c0_i32, %c0_i32_0 : i32, i32
  }
  func.func @transform_6(%arg0: i32, %arg1: i32, %arg2: i32) -> (i32, i32) {
    %c0_i32 = arith.constant 0 : i32
    %c0_i32_0 = arith.constant 0 : i32
    return %arg1, %c0_i32 : i32, i32
  }
}

</mosaic_0001>

<bundles_post_ra>
// kernel: tpu_custom_call.1
= control target key start
LH: loop header
LB: loop body
LE: loop exit
PB: predicated region body
PF: predicated region fallthrough
CT: control target
= control target key end

     0   :  { %11 = vsyncpa [#allocation7], 0  ;;  %s3312_s0 = inlined_call_operand.hbm [shape: f32[16,128], index: 0, kind: input, shape index: {}]   ;;  %s3313_s1 = inlined_call_operand.hbm [shape: f32[2,128,128], index: 1, kind: input, shape index: {}]   ;;  %s3314_s2 = inlined_call_operand.vmem [shape: f32[2,1,128], index: 2, kind: input, shape index: {}]   ;;  %s3315_s3 = inlined_call_operand.hbm [shape: bf16[16,32], index: 3, kind: input, shape index: {}]   ;;  %s3316_s4 = inlined_call_operand.hbm [shape: f32[128,128], index: 4, kind: input, shape index: {}]   ;;  %s3317_s5 = inlined_call_operand.vmem [shape: f32[1,128], index: 5, kind: input, shape index: {}]   ;;  %s3318_s6 = inlined_call_operand.hbm [shape: f32[16,128], index: 6, kind: output, shape index: {}]  }
   0x1   :  { %13 = vsyncpa [#allocation7 + $0x1], 0 }
   0x2   :  { %14 = vsyncpa [#allocation10], 0 }
   0x3   :  { %15 = vsyncpa [#allocation8], 0  ;;  %s2990_s21 = smov 0   ;;  %s2992_s22 = smov 0  }
   0x4   :  { %s2994_s23 = smov 0   ;;  %s2996_s24 = smov 0  }
   0x5   :  { %s2998_s25 = smov 0   ;;  %s3000_s26 = smov 0  }
   0x6 LB: > { %s3321_s27 = sadd.s32 4294967295, %s2927_s26   ;;  %p60_p0 = scmp.ne.s32.totalorder %s2911_s22, %s2907_s21  ;;  %s2927_s26 = sphi %s3000_s26, %s21_s26   ;;  %s2923_s25 = sphi %s2998_s25, %s3336_s25   ;;  %s2919_s24 = sphi %s2996_s24, %s3335_s24   ;;  %s2915_s23 = sphi %s2994_s23, %s3334_s23   ;;  %s2911_s22 = sphi %s2992_s22, %s3333_s22   ;;  %s2907_s21 = sphi %s2990_s21, %s3332_s21  }
   0x7   : > { %p3022_p1 = scmp.eq.s32.totalorder %s3321_s27, 0  ;;  %p2223_p2 = scmp.ge.s32.totalorder %s2927_s26, 1 }
   0x8   : > { %p193_p3 = scmp.lt.s32.totalorder %s2927_s26, 3  ;;  %s2929_s7 = smov [#allocation9]  }
   0x9   : > { %s3323_s28 = scalar_select %p3022_p1, 1, 0 }
   0xa   : > { %p3030_p4 = por %p3022_p1, %p60_p0  ;;  %p3034_p5 = pnand %p2223_p2, %p193_p3 }
   0xb   : > { %s209_s8 = sshll.u32 %s2929_s7, 4  ;;  %s2930_s10 = smov [#allocation11]   ;;  %s210_s8 = int_to_ptr.vmem [resolvable:$true] %s209_s8 }
   0xc   : > { %p2562_p6 = pneg %p3034_p5  ;;  %s222_s11 = sshll.u32 %s2930_s10, 4  ;;  %s223_s11 = int_to_ptr.vmem [resolvable:$true] %s222_s11 }
   0xd   : > { %s2748_s12 = scalar_lea.vmem %s210_s8, 128  ;;  %p2756_p12 = scmp.lt.s32.totalorder %s210_s8, %s210_s8 }
   0xe   : > { %p3042_p7 = pnand %p2562_p6, %p3022_p1  ;;  %p2749_p9 = scmp.ne.s32.totalorder %s210_s8, %s2748_s12 }
   0xf   : > { %p2757_p13 = scmp.lt.s32.totalorder %s2748_s12, %s2748_s12 }
  0x10   : > { %p2739_p8 = pneg %p3042_p7 }
  0x11   : > { %p2758_p0 = por %p2757_p13, %p2756_p12 }
  0x12   : > { %p2751_p10 = pnand %p2749_p9, %p2739_p8 }
  0x14   : > { %p2752_p11 = pneg %p2751_p10 }
  0x16   : > { %p2759_p2 = pnand %p2758_p0, %p2752_p11 }
  0x18   : > { %2762 = shalt.err (!%p2759_p2)
}
  0x19   : > { %s2931_s13 = smov 64   ;;  %s2932_s14 = smov 4  }
  0x1a   : > { %2565 = dma.hbm_to_vmem [thread:$0]  (!%p3042_p7), %s3315_s3, 128, %s210_s8, [#allocation10], %s2931_s13, %s2931_s13, %s2932_s14  }
  0x1b   : > { %s2774_s17 = scalar_lea.vmem %s223_s11, 2048  ;;  %p2782_p10 = scmp.lt.s32.totalorder %s223_s11, %s223_s11 }
  0x1c   : > { %p2775_p3 = scmp.ne.s32.totalorder %s223_s11, %s2774_s17  ;;  %p2783_p1 = scmp.lt.s32.totalorder %s2774_s17, %s2774_s17 }
  0x1e   : > { %p2777_p6 = pnand %p2775_p3, %p2739_p8  ;;  %p2784_p12 = por %p2783_p1, %p2782_p10 }
  0x20   : > { %p2778_p9 = pneg %p2777_p6 }
  0x22   : > { %p2785_p11 = pnand %p2784_p12, %p2778_p9 }
  0x24   : > { %2788 = shalt.err (!%p2785_p11)
}
  0x25   : > { %s3322_s18 = smov 128   ;;  %s2934_s19 = smov 8  }
  0x26   : > { %2568 = dma.hbm_to_vmem [thread:$0]  (!%p3042_p7), %s3316_s4, 2048, %s223_s11, [#allocation10], %s3322_s18, %s3322_s18, %s2934_s19  }
  0x27   : > { %s40_s7 = sadd.s32 1, %s2923_s25  ;;  %s47_s8 = sadd.s32 1, %s2915_s23 }
  0x28   : > { %p42_p1 = scmp.ge.s32.totalorder %s40_s7, 2  ;;  %p54_p8 = scmp.ne.s32.totalorder %s2915_s23, %s2911_s22 }
  0x29   : > { %p55_p13 = scmp.eq.s32.totalorder %s2927_s26, 0  ;;  %p2575_p0 = scmp.lt.s32.totalorder %s2927_s26, 2 }
  0x2a   : > { %s3338_s7 = smov (%p42_p1, %s40_s7), 0  ;;  %s239_s10 = sand.u32 1, %s2915_s23  }
  0x2b   : > { %p56_p2 = por %p55_p13, %p54_p8  ;;  %s44_s9 = ssub.s32 %s2923_s25, %s3338_s7 }
  0x2c   : > { %p45_p3 = scmp.eq.s32.totalorder %s44_s9, 0  ;;  %s2227_s12 = sshll.u32 %s239_s10, 7 }
  0x2d   : > { %s2306_s13 = sshll.u32 %s2923_s25, 11  ;;  %s243_s17 = scalar_lea.vmem [#allocation6], %s2227_s12 }
  0x2e   : > { %s3080_s14 = scalar_select %p45_p3, %s2915_s23, %s47_s8  }
  0x2f   : > { %s249_s16 = scalar_lea.hbm %s3313_s1, %s2306_s13  ;;  %s250_s20 = sshll.u32 %s243_s17, 4  ;;  %s251_s20 = int_to_ptr.vmem [resolvable:$true] %s250_s20 }
  0x30   : > { %p3087_p7 = pnand %p2575_p0, %p56_p2  ;;  %s240_s27 = scalar_lea.sflag [#allocation7], %s239_s10 }
  0x31   : > { %s2802_s9 = scalar_lea.vmem %s251_s20, 2048  ;;  %s2935_s8 = smov [#allocation6]  }
  0x32   : > { %p2791_p6 = pneg %p3087_p7  ;;  %p2803_p9 = scmp.ne.s32.totalorder %s251_s20, %s2802_s9 }
  0x33   : > { %s2807_s18 = sshll.u32 %s2935_s8, 4  ;;  %s2808_s18 = int_to_ptr.vmem [resolvable:$false] %s2807_s18 }
  0x34   : > { %p2805_p10 = pnand %p2803_p9, %p2791_p6  ;;  %s2809_s13 = scalar_lea.vmem %s2808_s18, 4096 }
  0x35   : > { %p2810_p11 = scmp.lt.s32.totalorder %s251_s20, %s2808_s18  ;;  %p2811_p1 = scmp.lt.s32.totalorder %s2809_s13, %s2802_s9 }
  0x36   : > { %p2806_p12 = pneg %p2805_p10 }
  0x37   : > { %p2812_p8 = por %p2811_p1, %p2810_p11 }
  0x39   : > { %p2813_p13 = pnand %p2812_p8, %p2806_p12 }
  0x3b   : > { %2816 = shalt.err (!%p2813_p13)
}
  0x3c   : > { %s3328_s12 = smov 128   ;;  %268 = sbr.rel (%p3034_p5) target bundleno = 1136 (0x470), region = 40 }
  0x3d   : > { %2572 = dma.hbm_to_vmem [thread:$0]  (!%p3087_p7), %s249_s16, 2048, %s251_s20, %s240_s27, %s3328_s12, %s3328_s12, %s2934_s19  }
  0x3e   : > { %s270_s10 = sand.u32 (!%p3034_p5), 1, %s2911_s22  }
  0x3f   : > { %s2231_s15 = sshll.u32 (!%p3034_p5), %s270_s10, 7  ;;  %s271_s11 = scalar_lea.sflag (!%p3034_p5), [#allocation7], %s270_s10 }
  0x40   : > { %s3101_s17 = scalar_lea.vmem (!%p3034_p5), [#allocation6], %s2231_s15 }
  0x41   : > { %2890 = dma.done.wait (%p3030_p4), %s271_s11, 2048  }
  0x42   : > { %2892 = vsyncadd (%p3030_p4), %s271_s11, 4294965248  ;;  %p3329_p0 = scmp.ne.s32.totalorder %s3323_s28, 0 }
  0x44   : > { %2894 = dma.done.wait (%p3329_p0), [#allocation10], 2176  }
  0x45   : > { %2896 = vsyncadd (%p3329_p0), [#allocation10], 4294965120  ;;  %p307_p5 = scmp.lt.s32.totalorder %s2919_s24, 1  ;;  %p2578_p2 = scmp.eq.s32.totalorder %s2919_s24, 0 }
  0x46   : > { %s2936_s30 = smov [#allocation2]  }
  0x47   : > { %s3114_s27 = scalar_select %p307_p5, %s2919_s24, 1 }
  0x48   : > { %s329_s18 = sshll.u32 %s2936_s30, 4  ;;  %s330_s18 = int_to_ptr.vmem [resolvable:$true] %s329_s18 }
  0x49   : > { %s309_s16 = scalar_lea.vmem %s3314_s2, %s3114_s27  ;;  %s2827_s20 = scalar_lea.vmem %s330_s18, 256 }
  0x4a   : > { %p2828_p4 = scmp.ne.s32.totalorder %s330_s18, %s2827_s20  ;;  %p2834_p6 = scmp.lt.s32.totalorder %s330_s18, %s330_s18 }
  0x4b   : > { %p2835_p9 = scmp.lt.s32.totalorder %s2827_s20, %s2827_s20 }
  0x4c   : > { %p2829_p3 = pnand %p2828_p4, %p2578_p2 }
  0x4d   : > { %p2836_p10 = por %p2835_p9, %p2834_p6 }
  0x4e   : > { %p2830_p7 = pneg %p2829_p3 }
  0x50   : > { %p2837_p12 = pnand %p2836_p10, %p2830_p7 }
  0x52   : > { %2840 = shalt.err (!%p2837_p12)  }
  0x53   : > { %2556 = dma.hbm_to_vmem [thread:$0]  (%p2578_p2), %s3312_s0, 256, %s330_s18, [#allocation5] }
  0x54   : > { %2898 = dma.done.wait (%p2578_p2), [#allocation5], 256 }
  0x55   : > { %2900 = vsyncadd (%p2578_p2), [#allocation5], 4294967040  ;;  %v353_v0 = vld [vmem:[%s3101_s17 + $0x78] sm:$0xff]  ;;  %v352_v1 = vld [vmem:[%s3101_s17 + $0x70] sm:$0xff]  ;;  %s2937_s9 = smov 126   ;;  %s2938_s8 = smov 122  }
  0x56   : > { %2395 = vmatprep.subr.mxu0 %v353_v0  ;;  %v351_v2 = vld [vmem:[%s3101_s17 + $0x68] sm:$0xff]  ;;  %v350_v3 = vld [vmem:[%s3101_s17 + $0x60] sm:$0xff]  ;;  %v349_v5 = vld [vmem:[%s3101_s17 + $0x58] sm:$0xff]  ;;  %s2939_s13 = smov 124   ;;  %s2940_s12 = smov 120   ;;  %vm447_vm0 = vcmask 15360  }
  0x57   : > { %2396 = vmatpush3.msra.mxu0 %v353_v0  ;;  %v336_v4 = vld [vmem:[#allocation2] sm:$0xff]  ;;  %v348_v9 = vld [vmem:[%s3101_s17 + $0x50] sm:$0xff]  ;;  %v347_v11 = vld [vmem:[%s3101_s17 + $0x48] sm:$0xff]  ;;  %s2941_s10 = smov 118   ;;  %s2942_s15 = smov 116   ;;  %vm445_vm1 = vcmask 1040384  }
  0x58   : > { %2397 = vmatprep.subr.mxu0 %v352_v1  ;;  %2427 = vmatprep.mubr.f32.mxu0 %v336_v4  ;;  %v3136_v6 = vld [vmem:[#allocation9] sm:$0xff]   ;;  %v345_v13 = vld [vmem:[%s3101_s17 + $0x38] sm:$0xff]  ;;  %v344_v14 = vld [vmem:[%s3101_s17 + $0x30] sm:$0xff]  ;;  %s2943_s11 = smov 114   ;;  %s2944_s30 = smov 112   ;;  %vm454_vm2 = vcmask 1041408  }
  0x59   : > { %2398 = vmatpush3.msra.mxu0 %v352_v1  ;;  %v2309_v7 = vunpack.c.l.bf16 %v3136_v6  ;;  %v2310_v8 = vunpack.c.h.bf16 %v3136_v6  ;;  %v346_v12 = vld [vmem:[%s3101_s17 + $0x40] sm:$0xff]  ;;  %v343_v15 = vld [vmem:[%s3101_s17 + $0x28] sm:$0xff]  ;;  %v341_v17 = vld [vmem:[%s3101_s17 + $0x18] sm:$0xff]  ;;  %s2945_s18 = smov 110   ;;  %s2946_s19 = smov 108  }
  0x5a   : > { %2399 = vmatprep.subr.mxu0 %v351_v2  ;;  %v342_v16 = vld [vmem:[%s3101_s17 + $0x20] sm:$0xff]  ;;  %v340_v18 = vld [vmem:[%s3101_s17 + $0x10] sm:$0xff]  ;;  %v339_v19 = vld [vmem:[%s3101_s17 + $0x8] sm:$0xff]  ;;  %s2947_s29 = smov 106   ;;  %s2948_s20 = smov 104  }
  0x5b   : > { %2400 = vmatpush3.msra.mxu0 %v351_v2  ;;  %v3145_v10 = vpack.i.bf16 %v2310_v8, %v2309_v7  ;;  %v338_v20 = vld [vmem:[%s3101_s17] sm:$0xff]  ;;  %v337_v21 = vld [vmem:[#allocation2 + $0x8] sm:$0xff]  ;;  %s2949_s28 = smov 102   ;;  %s2950_s21 = smov 100   ;;  %2432 = vmatprep.mubr.msk.f32.mxu1 %vm447_vm0, %v2309_v7 }
  0x5c   : > { %2401 = vmatprep.subr.mxu0 %v350_v3  ;;  %s2951_s17 = smov 98   ;;  %p2299_p11 = scmp.ne.s32.totalorder %s2919_s24, 1 }
  0x5d   : > { %2402 = vmatpush3.msra.mxu0 %v350_v3  ;;  %2655 = vrot.lane.b32.xlu0 %v3145_v10, %s2937_s9 }
  0x5e   : > { %2403 = vmatprep.subr.mxu0 %v349_v5  ;;  %2665 = vrot.lane.b32.xlu1 %v3145_v10, %s2938_s8 }
  0x5f   : > { %2404 = vmatpush3.msra.mxu0 %v349_v5 }
  0x60   : > { %2405 = vmatprep.subr.mxu0 %v348_v9 }
  0x61   : > { %2406 = vmatpush3.msra.mxu0 %v348_v9  ;;  %2660 = vrot.lane.b32.xlu0 %v3145_v10, %s2939_s13 }
  0x62   : > { %2407 = vmatprep.subr.mxu0 %v347_v11  ;;  %2670 = vrot.lane.b32.xlu1 %v3145_v10, %s2940_s12 }
  0x63   : > { %2408 = vmatpush3.msra.mxu0 %v347_v11 }
  0x64   : > { %2409 = vmatprep.subr.mxu0 %v346_v12 }
  0x65   : > { %2410 = vmatpush3.msra.mxu0 %v346_v12  ;;  %2675 = vrot.lane.b32.xlu0 %v3145_v10, %s2941_s10 }
  0x66   : > { %2411 = vmatprep.subr.mxu0 %v345_v13  ;;  %2680 = vrot.lane.b32.xlu1 %v3145_v10, %s2942_s15 }
  0x67   : > { %2412 = vmatpush3.msra.mxu0 %v345_v13 }
  0x68   : > { %2413 = vmatprep.subr.mxu0 %v344_v14 }
  0x69   : > { %2414 = vmatpush3.msra.mxu0 %v344_v14  ;;  %2685 = vrot.lane.b32.xlu0 %v3145_v10, %s2943_s11 }
  0x6a   : > { %2415 = vmatprep.subr.mxu0 %v343_v15  ;;  %2690 = vrot.lane.b32.xlu1 %v3145_v10, %s2944_s30 }
  0x6b   : > { %2416 = vmatpush3.msra.mxu0 %v343_v15 }
  0x6c   : > { %2417 = vmatprep.subr.mxu0 %v342_v16 }
  0x6d   : > { %2418 = vmatpush3.msra.mxu0 %v342_v16  ;;  %2695 = vrot.lane.b32.xlu0 %v3145_v10, %s2945_s18 }
  0x6e   : > { %2419 = vmatprep.subr.mxu0 %v341_v17  ;;  %2700 = vrot.lane.b32.xlu1 %v3145_v10, %s2946_s19 }
  0x6f   : > { %2420 = vmatpush3.msra.mxu0 %v341_v17 }
  0x70   : > { %2421 = vmatprep.subr.mxu0 %v340_v18 }
  0x71   : > { %2422 = vmatpush3.msra.mxu0 %v340_v18  ;;  %2705 = vrot.lane.b32.xlu0 %v3145_v10, %s2947_s29 }
  0x72   : > { %2423 = vmatprep.subr.mxu0 %v339_v19  ;;  %2710 = vrot.lane.b32.xlu1 %v3145_v10, %s2948_s20 }
  0x73   : > { %2424 = vmatpush3.msra.mxu0 %v339_v19 }
  0x74   : > { %2425 = vmatprep.subr.mxu0 %v338_v20 }
  0x75   : > { %2426 = vmatpush3.msra.mxu0 %v338_v20  ;;  %2715 = vrot.lane.b32.xlu0 %v3145_v10, %s2949_s28 }
  0x76   : > { %2428 = vmatmul.mubr.f32.vlgmr.msra.gmra.mxu0 %v337_v21  ;;  %2720 = vrot.lane.b32.xlu1 %v3145_v10, %s2950_s21 }
  0x79   : > { %2725 = vrot.lane.b32.xlu0 %v3145_v10, %s2951_s17 }
  0xcf   : > { %v2656_v22 = vpop.permute.xlu0 %2655 }
  0xd0   : > { %v2657_v44 = vunpack.i.l.bf16 %v2656_v22  ;;  %v2658_v47 = vunpack.i.h.bf16 %v2656_v22  ;;  %v2666_v49 = vpop.permute.xlu1 %2665 }
  0xd1   : > { %v2667_v60 = vunpack.i.l.bf16 %v2666_v49  ;;  %v2668_v0 = vunpack.i.h.bf16 %v2666_v49 }
  0xd3   : > { %v3175_v23 = vpop.permute.xlu0 %2660 }
  0xd4   : > { %v2662_v55 = vunpack.i.l.bf16 %v3175_v23  ;;  %v2663_v57 = vunpack.i.h.bf16 %v3175_v23  ;;  %v2671_v62 = vpop.permute.xlu1 %2670 }
  0xd5   : > { %v2672_v2 = vunpack.i.l.bf16 %v2671_v62  ;;  %v2673_v4 = vunpack.i.h.bf16 %v2671_v62 }
  0xd7   : > { %v3177_v24 = vpop.permute.xlu0 %2675 }
  0xd8   : > { %v2681_v5 = vpop.permute.xlu1 %2680  ;;  %v2677_v6 = vunpack.i.l.bf16 %v3177_v24  ;;  %v2678_v9 = vunpack.i.h.bf16 %v3177_v24 }
  0xd9   : > { %v2682_v12 = vunpack.i.l.bf16 %v2681_v5  ;;  %v2683_v14 = vunpack.i.h.bf16 %v2681_v5 }
  0xdb   : > { %v3179_v25 = vpop.permute.xlu0 %2685 }
  0xdc   : > { %v2691_v10 = vpop.permute.xlu1 %2690  ;;  %v2687_v15 = vunpack.i.l.bf16 %v3179_v25  ;;  %v2688_v19 = vunpack.i.h.bf16 %v3179_v25 }
  0xdd   : > { %v2692_v21 = vunpack.i.l.bf16 %v2691_v10  ;;  %v2693_v23 = vunpack.i.h.bf16 %v2691_v10 }
  0xdf   : > { %v2696_v26 = vpop.permute.xlu0 %2695 }
  0xe0   : > { %v2697_v27 = vunpack.i.l.bf16 %v2696_v26  ;;  %v2698_v31 = vunpack.i.h.bf16 %v2696_v26  ;;  %v2701_v18 = vpop.permute.xlu1 %2700 }
  0xe1   : > { %v2702_v26 = vunpack.i.l.bf16 %v2701_v18 }
  0xe2   : > { %2477 = vmatprep.mubr.msk.f32.mxu0 %vm447_vm0, %v2697_v27 }
  0xe3   : > { %v2706_v30 = vpop.permute.xlu0 %2705 }
  0xe4   : > { %v2707_v39 = vunpack.i.l.bf16 %v2706_v30  ;;  %v2708_v42 = vunpack.i.h.bf16 %v2706_v30  ;;  %v2711_v24 = vpop.permute.xlu1 %2710 }
  0xe5   : > { %v2712_v30 = vunpack.i.l.bf16 %v2711_v24 }
  0xe7   : > { %v2716_v41 = vpop.permute.xlu0 %2715 }
  0xe8   : > { %v2717_v50 = vunpack.i.l.bf16 %v2716_v41  ;;  %v2718_v53 = vunpack.i.h.bf16 %v2716_v41 }
  0xeb   : > { %v2726_v52 = vpop.permute.xlu0 %2725 }
  0xec   : > { %v2727_v58 = vunpack.i.l.bf16 %v2726_v52  ;;  %v2728_v63 = vunpack.i.h.bf16 %v2726_v52 }
 0x136   : > { %v2429_v28 = vpop.f32.mrf.mxu0 }
 0x137   : > { %430 = vst [vmem:[#allocation3 + $0x8] sm:$0xff] %v2429_v28  ;;  %v2703_v28 = vunpack.i.h.bf16 %v2701_v18 }
 0x138   : > { %v420_v29 = vpop.f32.mrf.mxu0 }
 0x139   : > { %429 = vst [vmem:[#allocation3] sm:$0xff] %v420_v29 }
 0x13e   : > { %v2270_v32 = vld [vmem:[#allocation3 + $0x9] sm:$0x1]  ;;  %v2278_v34 = vld [vmem:[#allocation3 + $0xb] sm:$0x1]  ;;  %v2286_v38 = vld [vmem:[#allocation3 + $0xd] sm:$0x1] }
 0x13f   : > { %v1274_v33 = vsel %vm445_vm1, %v2270_v32, 1.0  ;;  %v1458_v40 = vsel %vm445_vm1, %v2278_v34, 1.0  ;;  %v1642_v46 = vsel %vm445_vm1, %v2286_v38, 1.0  ;;  %v2294_v48 = vld [vmem:[#allocation3 + $0xf] sm:$0x1]  ;;  %v2721_v32 = vpop.permute.xlu1 %2720 }
 0x140   : > { %2475 = vmatprep.subr.msk.mxu0 %vm454_vm2, %v1274_v33  ;;  %v444_v35 = vld [vmem:[#allocation3] sm:$0x1]  ;;  %v2238_v37 = vld [vmem:[#allocation3 + $0x1] sm:$0x1]  ;;  %v2242_v43 = vld [vmem:[#allocation3 + $0x2] sm:$0x1] }
 0x141   : > { %2476 = vmatpush3.msk.msra.mxu0 %vm454_vm2, %v1274_v33  ;;  %v446_v36 = vsel %vm445_vm1, %v444_v35, 1.0  ;;  %v538_v45 = vsel %vm445_vm1, %v2238_v37, 1.0  ;;  %v630_v51 = vsel %vm445_vm1, %v2242_v43, 1.0  ;;  %v2246_v54 = vld [vmem:[#allocation3 + $0x3] sm:$0x1]  ;;  %v1826_v56 = vsel %vm445_vm1, %v2294_v48, 1.0 }
 0x142   : > { %2430 = vmatprep.subr.msk.mxu1 %vm454_vm2, %v446_v36  ;;  %2478 = vmatmul.mubr.msk.f32.vlgmr.msra.gmra.mxu0 %vm447_vm0, %v2698_v31  ;;  %v722_v59 = vsel %vm445_vm1, %v2246_v54, 1.0  ;;  %v2250_v61 = vld [vmem:[#allocation3 + $0x4] sm:$0x1]  ;;  %v2254_v3 = vld [vmem:[#allocation3 + $0x5] sm:$0x1]  ;;  %v2713_v33 = vunpack.i.h.bf16 %v2711_v24  ;;  %v2722_v35 = vunpack.i.l.bf16 %v2721_v32 }
 0x143   : > { %2485 = vmatprep.subr.msk.mxu0 %vm454_vm2, %v1458_v40  ;;  %2431 = vmatpush3.msk.msra.mxu1 %vm454_vm2, %v446_v36  ;;  %v814_v1 = vsel %vm445_vm1, %v2250_v61, 1.0  ;;  %v906_v7 = vsel %vm445_vm1, %v2254_v3, 1.0  ;;  %v2262_v13 = vld [vmem:[#allocation3 + $0x7] sm:$0x1]  ;;  %v2266_v17 = vld [vmem:[#allocation3 + $0x8] sm:$0x1]  ;;  %v2723_v36 = vunpack.i.h.bf16 %v2721_v32 }
 0x144   : > { %2486 = vmatpush3.msk.msra.mxu0 %vm454_vm2, %v1458_v40  ;;  %2433 = vmatmul.mubr.msk.f32.vlgmr.msra.gmra.mxu1 %vm447_vm0, %v2310_v8  ;;  %v2258_v8 = vld [vmem:[#allocation3 + $0x6] sm:$0x1]  ;;  %v1090_v16 = vsel %vm445_vm1, %v2262_v13, 1.0  ;;  %v1182_v20 = vsel %vm445_vm1, %v2266_v17, 1.0  ;;  %v2274_v22 = vld [vmem:[#allocation3 + $0xa] sm:$0x1] }
 0x145   : > { %2435 = vmatprep.subr.msk.mxu1 %vm454_vm2, %v538_v45  ;;  %2495 = vmatprep.subr.msk.mxu0 %vm454_vm2, %v1642_v46  ;;  %v998_v11 = vsel %vm445_vm1, %v2258_v8, 1.0  ;;  %v1366_v25 = vsel %vm445_vm1, %v2274_v22, 1.0  ;;  %v2282_v27 = vld [vmem:[#allocation3 + $0xc] sm:$0x1]  ;;  %v2290_v31 = vld [vmem:[#allocation3 + $0xe] sm:$0x1] }
 0x146   : > { %2436 = vmatpush3.msk.msra.mxu1 %vm454_vm2, %v538_v45  ;;  %2487 = vmatprep.mubr.msk.f32.mxu0 %vm447_vm0, %v2707_v39  ;;  %v1550_v29 = vsel %vm445_vm1, %v2282_v27, 1.0  ;;  %v1734_v34 = vsel %vm445_vm1, %v2290_v31, 1.0  ;;  %v2298_v32 = vld [vmem:[%s309_s16] ss:$0 sm:$0xff] }
 0x147   : > { %2440 = vmatprep.subr.msk.mxu1 %vm454_vm2, %v630_v51  ;;  %2488 = vmatmul.mubr.msk.f32.vlgmr.msra.gmra.mxu0 %vm447_vm0, %v2708_v42 }
 0x148   : > { %2496 = vmatpush3.msk.msra.mxu0 %vm454_vm2, %v1642_v46  ;;  %2437 = vmatprep.mubr.msk.f32.mxu1 %vm447_vm0, %v2657_v44 }
 0x149   : > { %2505 = vmatprep.subr.msk.mxu0 %vm454_vm2, %v1826_v56  ;;  %2438 = vmatmul.mubr.msk.f32.vlgmr.msra.gmra.mxu1 %vm447_vm0, %v2658_v47 }
 0x14a   : > { %2441 = vmatpush3.msk.msra.mxu1 %vm454_vm2, %v630_v51  ;;  %2497 = vmatprep.mubr.msk.f32.mxu0 %vm447_vm0, %v2717_v50 }
 0x14b   : > { %2445 = vmatprep.subr.msk.mxu1 %vm454_vm2, %v722_v59  ;;  %2498 = vmatmul.mubr.msk.f32.vlgmr.msra.gmra.mxu0 %vm447_vm0, %v2718_v53 }
 0x14c   : > { %2506 = vmatpush3.msk.msra.mxu0 %vm454_vm2, %v1826_v56  ;;  %2442 = vmatprep.mubr.msk.f32.mxu1 %vm447_vm0, %v2662_v55 }
 0x14d   : > { %2443 = vmatmul.mubr.msk.f32.vlgmr.msra.gmra.mxu1 %vm447_vm0, %v2663_v57  ;;  %2507 = vmatprep.mubr.msk.f32.mxu0 %vm447_vm0, %v2727_v58 }
 0x14e   : > { %2446 = vmatpush3.msk.msra.mxu1 %vm454_vm2, %v722_v59  ;;  %2447 = vmatprep.mubr.msk.f32.mxu1 %vm447_vm0, %v2667_v60 }
 0x14f   : > { %2450 = vmatprep.subr.msk.mxu1 %vm454_vm2, %v814_v1  ;;  %2508 = vmatmul.mubr.msk.f32.vlgmr.msra.gmra.mxu0 %vm447_vm0, %v2728_v63 }
 0x151   : > { %2448 = vmatmul.mubr.msk.f32.vlgmr.msra.gmra.mxu1 %vm447_vm0, %v2668_v0 }
 0x152   : > { %2451 = vmatpush3.msk.msra.mxu1 %vm454_vm2, %v814_v1  ;;  %2452 = vmatprep.mubr.msk.f32.mxu1 %vm447_vm0, %v2672_v2 }
 0x153   : > { %2455 = vmatprep.subr.msk.mxu1 %vm454_vm2, %v906_v7 }
 0x155   : > { %2453 = vmatmul.mubr.msk.f32.vlgmr.msra.gmra.mxu1 %vm447_vm0, %v2673_v4 }
 0x156   : > { %2456 = vmatpush3.msk.msra.mxu1 %vm454_vm2, %v906_v7  ;;  %2457 = vmatprep.mubr.msk.f32.mxu1 %vm447_vm0, %v2677_v6 }
 0x157   : > { %2460 = vmatprep.subr.msk.mxu1 %vm454_vm2, %v998_v11 }
 0x159   : > { %2458 = vmatmul.mubr.msk.f32.vlgmr.msra.gmra.mxu1 %vm447_vm0, %v2678_v9 }
 0x15a   : > { %2461 = vmatpush3.msk.msra.mxu1 %vm454_vm2, %v998_v11  ;;  %2462 = vmatprep.mubr.msk.f32.mxu1 %vm447_vm0, %v2682_v12 }
 0x15b   : > { %2465 = vmatprep.subr.msk.mxu1 %vm454_vm2, %v1090_v16 }
 0x15d   : > { %2463 = vmatmul.mubr.msk.f32.vlgmr.msra.gmra.mxu1 %vm447_vm0, %v2683_v14 }
 0x15e   : > { %2466 = vmatpush3.msk.msra.mxu1 %vm454_vm2, %v1090_v16  ;;  %2467 = vmatprep.mubr.msk.f32.mxu1 %vm447_vm0, %v2687_v15 }
 0x15f   : > { %2470 = vmatprep.subr.msk.mxu1 %vm454_vm2, %v1182_v20 }
 0x161   : > { %2468 = vmatmul.mubr.msk.f32.vlgmr.msra.gmra.mxu1 %vm447_vm0, %v2688_v19 }
 0x162   : > { %2471 = vmatpush3.msk.msra.mxu1 %vm454_vm2, %v1182_v20  ;;  %2472 = vmatprep.mubr.msk.f32.mxu1 %vm447_vm0, %v2692_v21 }
 0x163   : > { %2480 = vmatprep.subr.msk.mxu1 %vm454_vm2, %v1366_v25 }
 0x165   : > { %2473 = vmatmul.mubr.msk.f32.vlgmr.msra.gmra.mxu1 %vm447_vm0, %v2693_v23 }
 0x166   : > { %2481 = vmatpush3.msk.msra.mxu1 %vm454_vm2, %v1366_v25  ;;  %2482 = vmatprep.mubr.msk.f32.mxu1 %vm447_vm0, %v2702_v26 }
 0x167   : > { %2490 = vmatprep.subr.msk.mxu1 %vm454_vm2, %v1550_v29 }
 0x169   : > { %2483 = vmatmul.mubr.msk.f32.vlgmr.msra.gmra.mxu1 %vm447_vm0, %v2703_v28 }
 0x16a   : > { %2491 = vmatpush3.msk.msra.mxu1 %vm454_vm2, %v1550_v29  ;;  %2492 = vmatprep.mubr.msk.f32.mxu1 %vm447_vm0, %v2712_v30 }
 0x16b   : > { %2500 = vmatprep.subr.msk.mxu1 %vm454_vm2, %v1734_v34 }
 0x16d   : > { %2493 = vmatmul.mubr.msk.f32.vlgmr.msra.gmra.mxu1 %vm447_vm0, %v2713_v33 }
 0x16e   : > { %2501 = vmatpush3.msk.msra.mxu1 %vm454_vm2, %v1734_v34  ;;  %2502 = vmatprep.mubr.msk.f32.mxu1 %vm447_vm0, %v2722_v35 }
 0x171   : > { %2503 = vmatmul.mubr.msk.f32.vlgmr.msra.gmra.mxu1 %vm447_vm0, %v2723_v36 }
 0x202   : > { %v2479_v51 = vpop.f32.mrf.mxu0 }
 0x204   : > { %v2434_v37 = vpop.f32.mrf.mxu1  ;;  %v1352_v58 = vpop.f32.mrf.mxu0 }
 0x205   : > { %v534_v46 = vmax.f32 %v2434_v37, -1e+30 }
 0x206   : > { %v524_v38 = vpop.f32.mrf.mxu1 }
 0x207   : > { %v533_v48 = vmax.f32 %v524_v38, -1e+30  ;;  %v2489_v1 = vpop.f32.mrf.mxu0 }
 0x209   : > { %v2439_v39 = vpop.f32.mrf.mxu1  ;;  %v1536_v8 = vpop.f32.mrf.mxu0 }
 0x20a   : > { %v626_v49 = vmax.f32 %v534_v46, %v2439_v39 }
 0x20b   : > { %v616_v40 = vpop.f32.mrf.mxu1  ;;  %v2499_v15 = vpop.f32.mrf.mxu0 }
 0x20c   : > { %v625_v52 = vmax.f32 %v533_v48, %v616_v40 }
 0x20d   : > { %v2444_v41 = vpop.f32.mrf.mxu1  ;;  %v1720_v22 = vpop.f32.mrf.mxu0 }
 0x20e   : > { %v718_v53 = vmax.f32 %v626_v49, %v2444_v41 }
 0x20f   : > { %v708_v42 = vpop.f32.mrf.mxu1  ;;  %v2509_v29 = vpop.f32.mrf.mxu0 }
 0x210   : > { %v717_v55 = vmax.f32 %v625_v52, %v708_v42 }
 0x211   : > { %v2449_v43 = vpop.f32.mrf.mxu1  ;;  %v1904_v36 = vpop.f32.mrf.mxu0 }
 0x212   : > { %v810_v56 = vmax.f32 %v718_v53, %v2449_v43 }
 0x213   : > { %v800_v44 = vpop.f32.mrf.mxu1 }
 0x214   : > { %v809_v59 = vmax.f32 %v717_v55, %v800_v44 }
 0x215   : > { %v2454_v45 = vpop.f32.mrf.mxu1 }
 0x216   : > { %v902_v60 = vmax.f32 %v810_v56, %v2454_v45 }
 0x217   : > { %v892_v47 = vpop.f32.mrf.mxu1 }
 0x218   : > { %v901_v62 = vmax.f32 %v809_v59, %v892_v47 }
 0x219   : > { %v2459_v50 = vpop.f32.mrf.mxu1 }
 0x21a   : > { %v994_v63 = vmax.f32 %v902_v60, %v2459_v50 }
 0x21b   : > { %v984_v54 = vpop.f32.mrf.mxu1 }
 0x21c   : > { %v993_v2 = vmax.f32 %v901_v62, %v984_v54 }
 0x21d   : > { %v2464_v57 = vpop.f32.mrf.mxu1 }
 0x21e   : > { %v1086_v3 = vmax.f32 %v994_v63, %v2464_v57 }
 0x21f   : > { %v1076_v61 = vpop.f32.mrf.mxu1 }
 0x220   : > { %v1085_v5 = vmax.f32 %v993_v2, %v1076_v61 }
 0x221   : > { %v2469_v0 = vpop.f32.mrf.mxu1 }
 0x222   : > { %v1178_v6 = vmax.f32 %v1086_v3, %v2469_v0 }
 0x223   : > { %v1168_v4 = vpop.f32.mrf.mxu1 }
 0x224   : > { %v1177_v9 = vmax.f32 %v1085_v5, %v1168_v4 }
 0x225   : > { %v2474_v7 = vpop.f32.mrf.mxu1 }
 0x226   : > { %v1270_v10 = vmax.f32 %v1178_v6, %v2474_v7 }
 0x227   : > { %v1260_v11 = vpop.f32.mrf.mxu1 }
 0x228   : > { %v1362_v12 = vmax.f32 %v1270_v10, %v2479_v51  ;;  %v1269_v13 = vmax.f32 %v1177_v9, %v1260_v11 }
 0x229   : > { %v2484_v14 = vpop.f32.mrf.mxu1 }
 0x22a   : > { %v1361_v16 = vmax.f32 %v1269_v13, %v1352_v58  ;;  %v1454_v17 = vmax.f32 %v1362_v12, %v2484_v14 }
 0x22b   : > { %v1444_v18 = vpop.f32.mrf.mxu1 }
 0x22c   : > { %v1546_v19 = vmax.f32 %v1454_v17, %v2489_v1  ;;  %v1453_v20 = vmax.f32 %v1361_v16, %v1444_v18 }
 0x22d   : > { %v2494_v21 = vpop.f32.mrf.mxu1 }
 0x22e   : > { %v1545_v23 = vmax.f32 %v1453_v20, %v1536_v8  ;;  %v1638_v24 = vmax.f32 %v1546_v19, %v2494_v21 }
 0x22f   : > { %v1628_v25 = vpop.f32.mrf.mxu1 }
 0x230   : > { %v1730_v26 = vmax.f32 %v1638_v24, %v2499_v15  ;;  %v1637_v27 = vmax.f32 %v1545_v23, %v1628_v25 }
 0x231   : > { %v2504_v28 = vpop.f32.mrf.mxu1 }
 0x232   : > { %v1729_v30 = vmax.f32 %v1637_v27, %v1720_v22  ;;  %v1822_v31 = vmax.f32 %v1730_v26, %v2504_v28 }
 0x233   : > { %v1812_v33 = vpop.f32.mrf.mxu1 }
 0x234   : > { %v1914_v34 = vmax.f32 %v1822_v31, %v2509_v29  ;;  %v1821_v35 = vmax.f32 %v1729_v30, %v1812_v33 }
 0x236   : > { %v1928_v37 = vadd.f32 %v2298_v32, %v1914_v34  ;;  %v1913_v38 = vmax.f32 %v1821_v35, %v1904_v36 }
 0x238   : > { %v1930_v39 = vmax.f32 %v1928_v37, 0.0  ;;  %v1927_v40 = vadd.f32 %v2298_v32, %v1913_v38  ;;  %1938 = sbr.rel (%p2299_p11) target bundleno = 1120 (0x460), region = 76 }
 0x23a   : > { %1934 = vst [vmem:[#allocation2 + $0x8] sm:$0xff] %v1930_v39  ;;  %v1929_v41 = vmax.f32 %v1927_v40, 0.0 }
 0x23c   : > { %1933 = vst [vmem:[#allocation2] sm:$0xff] %v1929_v41 }
 0x23d   : > { %v1954_v42 = vld [vmem:[#allocation11 + $0x78] sm:$0xff]  ;;  %v1953_v43 = vld [vmem:[#allocation11 + $0x70] sm:$0xff]  ;;  %2542 = vmatprep.mubr.f32.mxu0 %v1929_v41  ;;  %v1952_v44 = vld [vmem:[#allocation11 + $0x68] sm:$0xff] }
 0x23e   : > { %2510 = vmatprep.subr.mxu0 %v1954_v42  ;;  %v1951_v45 = vld [vmem:[#allocation11 + $0x60] sm:$0xff]  ;;  %v1950_v46 = vld [vmem:[#allocation11 + $0x58] sm:$0xff]  ;;  %v1949_v47 = vld [vmem:[#allocation11 + $0x50] sm:$0xff] }
 0x23f   : > { %2511 = vmatpush3.msra.mxu0 %v1954_v42  ;;  %v1948_v48 = vld [vmem:[#allocation11 + $0x48] sm:$0xff]  ;;  %v1947_v49 = vld [vmem:[#allocation11 + $0x40] sm:$0xff]  ;;  %v1946_v50 = vld [vmem:[#allocation11 + $0x38] sm:$0xff] }
 0x240   : > { %2512 = vmatprep.subr.mxu0 %v1953_v43  ;;  %v1945_v51 = vld [vmem:[#allocation11 + $0x30] sm:$0xff]  ;;  %v1944_v52 = vld [vmem:[#allocation11 + $0x28] sm:$0xff]  ;;  %v1943_v53 = vld [vmem:[#allocation11 + $0x20] sm:$0xff] }
 0x241   : > { %2513 = vmatpush3.msra.mxu0 %v1953_v43  ;;  %v1942_v54 = vld [vmem:[#allocation11 + $0x18] sm:$0xff]  ;;  %v1941_v55 = vld [vmem:[#allocation11 + $0x10] sm:$0xff]  ;;  %v1940_v56 = vld [vmem:[#allocation11 + $0x8] sm:$0xff] }
 0x242   : > { %2514 = vmatprep.subr.mxu0 %v1952_v44  ;;  %v1939_v57 = vld [vmem:[#allocation11] sm:$0xff]  ;;  %v2300_v59 = vld [vmem:[%s3317_s5] ss:$0 sm:$0xff] }
 0x243   : > { %2515 = vmatpush3.msra.mxu0 %v1952_v44 }
 0x244   : > { %2516 = vmatprep.subr.mxu0 %v1951_v45 }
 0x245   : > { %2517 = vmatpush3.msra.mxu0 %v1951_v45 }
 0x246   : > { %2518 = vmatprep.subr.mxu0 %v1950_v46 }
 0x247   : > { %2519 = vmatpush3.msra.mxu0 %v1950_v46 }
 0x248   : > { %2520 = vmatprep.subr.mxu0 %v1949_v47 }
 0x249   : > { %2521 = vmatpush3.msra.mxu0 %v1949_v47 }
 0x24a   : > { %2522 = vmatprep.subr.mxu0 %v1948_v48 }
 0x24b   : > { %2523 = vmatpush3.msra.mxu0 %v1948_v48 }
 0x24c   : > { %2524 = vmatprep.subr.mxu0 %v1947_v49 }
 0x24d   : > { %2525 = vmatpush3.msra.mxu0 %v1947_v49 }
 0x24e   : > { %2526 = vmatprep.subr.mxu0 %v1946_v50 }
 0x24f   : > { %2527 = vmatpush3.msra.mxu0 %v1946_v50 }
 0x250   : > { %2528 = vmatprep.subr.mxu0 %v1945_v51 }
 0x251   : > { %2529 = vmatpush3.msra.mxu0 %v1945_v51 }
 0x252   : > { %2530 = vmatprep.subr.mxu0 %v1944_v52 }
 0x253   : > { %2531 = vmatpush3.msra.mxu0 %v1944_v52 }
 0x254   : > { %2532 = vmatprep.subr.mxu0 %v1943_v53 }
 0x255   : > { %2533 = vmatpush3.msra.mxu0 %v1943_v53 }
 0x256   : > { %2534 = vmatprep.subr.mxu0 %v1942_v54 }
 0x257   : > { %2535 = vmatpush3.msra.mxu0 %v1942_v54 }
 0x258   : > { %2536 = vmatprep.subr.mxu0 %v1941_v55 }
 0x259   : > { %2537 = vmatpush3.msra.mxu0 %v1941_v55 }
 0x25a   : > { %2538 = vmatprep.subr.mxu0 %v1940_v56 }
 0x25b   : > { %2539 = vmatpush3.msra.mxu0 %v1940_v56 }
 0x25c   : > { %2540 = vmatprep.subr.mxu0 %v1939_v57 }
 0x25d   : > { %2541 = vmatpush3.msra.mxu0 %v1939_v57 }
 0x25e   : > { %2543 = vmatmul.mubr.f32.vlgmr.msra.gmra.mxu0 %v1930_v39 }
 0x31e   : > { %v2544_v58 = vpop.f32.mrf.mxu0 }
 0x31f   : > { %v2034_v62 = vadd.f32 %v2544_v58, %v2300_v59 }
 0x320   : > { %v2028_v60 = vpop.f32.mrf.mxu0 }
 0x321   : > { %v2029_v61 = vadd.f32 %v2300_v59, %v2028_v60 }
 0x323   : > { %2037 = vmax.xlane.f32.xlu0 %v2029_v61 }
 0x327   : > { %2039 = vmax.xlane.f32.xlu0 %v2034_v62 }
 0x3ac   : > { %v2038_v63 = vpop.xlane.xlu0 %2037 }
 0x3ad   : > { %v2041_v0 = vsub.f32 %v2029_v61, %v2038_v63 }
 0x3af   : > { %v2043_v1 = vmul.f32 1.442695, %v2041_v0 }
 0x3b0   : > { %v2040_v2 = vpop.xlane.xlu0 %2039 }
 0x3b1   : > { %v2042_v3 = vsub.f32 %v2034_v62, %v2040_v2  ;;  %2729 = vpow2.f32 %v2043_v1 }
 0x3b3   : > { %v2045_v4 = vmul.f32 1.442695, %v2042_v3 }
 0x3b5   : > { %2731 = vpow2.f32 %v2045_v4 }
 0x3be   : > { %v2730_v5 = vpop.eup %2729 }
 0x3bf   : > { %2047 = vadd.xlane.f32.xlu1 %v2730_v5 }
 0x3c2   : > { %v2732_v6 = vpop.eup %2731 }
 0x3c3   : > { %2049 = vadd.xlane.f32.xlu1 %v2732_v6 }
 0x448   : > { %v2048_v7 = vpop.xlane.xlu1 %2047 }
 0x449   : > { %2733 = vlog2.f32 %v2048_v7 }
 0x44c   : > { %v2050_v8 = vpop.xlane.xlu1 %2049 }
 0x44d   : > { %2735 = vlog2.f32 %v2050_v8 }
 0x456   : > { %v2734_v9 = vpop.eup %2733 }
 0x457   : > { %v2052_v10 = vmul.f32 0.6931472, %v2734_v9 }
 0x459   : > { %v2055_v11 = vsub.f32 %v2041_v0, %v2052_v10 }
 0x45a   : > { %v2736_v12 = vpop.eup %2735 }
 0x45b   : > { %2057 = vst [vmem:[#allocation12] sm:$0xff] %v2055_v11  ;;  %v2054_v13 = vmul.f32 0.6931472, %v2736_v12 }
 0x45d   : > { %v2056_v14 = vsub.f32 %v2042_v3, %v2054_v13 }
 0x45f   : > { %2058 = vst [vmem:[#allocation12 + $0x8] sm:$0xff] %v2056_v14 }
 0x460 PF: > { %s3330_s16 = sadd.s32 4294967295, %s2927_s26   ;;  %s2952_s12 = smov [#allocation12]  }
 0x461   : > { %p3279_p1 = scmp.eq.s32.totalorder %s3330_s16, 1  ;;  %s2068_s10 = sshll.u32 %s2952_s12, 4  ;;  %s2069_s10 = int_to_ptr.vmem [resolvable:$true] %s2068_s10 }
 0x462   : > { %s2841_s15 = scalar_lea.vmem %s2069_s10, 256  ;;  %p2848_p5 = scmp.lt.s32.totalorder %s2069_s10, %s2069_s10 }
 0x463   : > { %p2842_p8 = scmp.ne.s32.totalorder %s2069_s10, %s2841_s15  ;;  %p2849_p2 = scmp.lt.s32.totalorder %s2841_s15, %s2841_s15 }
 0x465   : > { %p2843_p13 = pnand %p2842_p8, %p3279_p1  ;;  %p2850_p4 = por %p2849_p2, %p2848_p5 }
 0x467   : > { %p2844_p0 = pneg %p2843_p13 }
 0x469   : > { %p2851_p3 = pnand %p2850_p4, %p2844_p0 }
 0x46b   : > { %2854 = shalt.err (!%p2851_p3)
}
 0x46c   : > { %s2953_s11 = smov 128   ;;  %s2954_s30 = smov 8  }
 0x46d   : > { %2559 = dma.vmem_to_hbm [thread:$0]  (%p3279_p1), %s2069_s10, 256, %s3318_s6, [#allocation8], %s2953_s11, %s2953_s11, %s2954_s30  }
 0x46e   : > { %2902 = dma.done.wait (%p3279_p1), [#allocation8], 256  }
 0x46f   : > { %2904 = vsyncadd (%p3279_p1), [#allocation8], 4294967040 }
 0x470 PF: > { %s21_s26 = sadd.s32 1, %s2927_s26   ;;  %s3332_s21 = smov %s2911_s22 }
 0x471   : > { %p18_p7 = scmp.ge.s32.totalorder %s21_s26, 4   ;;  %s3333_s22 = smov %s2915_s23 }
 0x472   : > { %s3334_s23 = smov %s3080_s14  ;;  %s3335_s24 = smov %s2923_s25 }
 0x473   : > { %s3336_s25 = smov %s3338_s7  ;;  %20 = sbr.rel (!%p18_p7) target bundleno = 6 (0x6), region = 131 }
 0x478   :  { %2084 = vsyncpa [#allocation7], 1 }
 0x479   :  { %2086 = vsyncpa [#allocation7 + $0x1], 1 }
 0x47a   :  { %2087 = vsyncpa [#allocation10], 1 }
 0x47b   :  { %2088 = vsyncpa [#allocation8], 1 }
 0x47c   :  { %2090 = vsyncpa [#allocation8 + $0x1], 1 }
 0x47d   :  { %2091 = vsyncmov [#allocation5] }
 0x480   :  { %s2092_s29 = vpop.sfrf %2091 }
 0x481   :  { %p2305_p6 = scmp.ne.s32.totalorder %s2092_s29, 0 }
 0x483   :  { %2096 = shalt.err (%p2305_p6)  }

</bundles_post_ra>
